<compile_context>
chip_gen: v7x
topology: tpu7x:2x2x1
jax: 0.10.0
libtpu: 0.0.40
codegen_flags: <defaults>
</compile_context>

<pallas_src>
from functools import partial

import jax
import jax.numpy as jnp
from jax import lax
from jax.experimental import pallas as pl
from jax.experimental.pallas import tpu as pltpu
import numpy as np

# ---- config (small, consistent with the module) ----
N_EMBD = 32
N_HEAD = 4
HEAD_SIZE = N_EMBD // N_HEAD
BLOCK_SIZE = 8          # T (sequence length == block_size)
BATCH = 2
HIDDEN = 4 * N_EMBD
EPS = 1e-5


def _layer_norm(x, gamma, beta):
    mean = jnp.mean(x, axis=-1, keepdims=True)
    var = jnp.mean((x - mean) ** 2, axis=-1, keepdims=True)
    return (x - mean) * lax.rsqrt(var + EPS) * gamma + beta


def transform_block_kernel(x_ref, w_ref, vec_ref, o_ref, *, batch, seq, n_head):
    B, T, H = batch, seq, n_head
    R = B * T                           # fused (batch * sequence) rows
    E = x_ref.shape[-1]
    HS = E // H
    HID = 4 * E
    bf16 = jnp.bfloat16

    x0 = x_ref[...]                     # (R, E) f32 fused slab

    # --- packed small vectors (one f32 (8, 128) slab -> static sub-slices) ---
    bp = vec_ref[0:1, 0:E]              # attention output-projection bias
    g1 = vec_ref[1:2, 0:E]              # ln1 gamma
    be1 = vec_ref[2:3, 0:E]             # ln1 beta
    g2 = vec_ref[3:4, 0:E]              # ln2 gamma
    be2 = vec_ref[4:5, 0:E]             # ln2 beta
    b2 = vec_ref[5:6, 0:E]              # ffn second bias
    b1 = vec_ref[6:7, 0:HID]            # ffn first bias

    # --- packed bf16 weight slab (224, 128): static, 16-row-aligned slices ---
    wkv = w_ref[0:E, 0:2 * E]           # (E, 2E) = [wk | wv] fused K/V weight
    wp = w_ref[E:2 * E, 0:E]            # (E, E)  attention output projection
    w1 = w_ref[2 * E:3 * E, 0:HID]      # (E, HID) ffn first layer
    w2 = w_ref[3 * E:3 * E + HID, 0:E]  # (HID, E) ffn second layer

    # ---- ln1 on the fused (B*T, E) slab (f32) ----
    h = _layer_norm(x0, g1, be1)

    # ---- multi-head self attention (q = key(x), as in the reference) ----
    # One fused matmul for K and V (bf16 operands, f32 accumulation).
    KV = jnp.dot(h.astype(bf16), wkv, preferred_element_type=jnp.float32)  # (R, 2E)
    K = KV[:, 0:E]
    V = KV[:, E:2 * E]

    # 0/1 head selector: sel[h, d] = 1 iff feature d belongs to head h.
    hd_ids = lax.broadcasted_iota(jnp.int32, (H, E), 0)
    d_ids = lax.broadcasted_iota(jnp.int32, (H, E), 1)
    in_head = (d_ids >= hd_ids * HS) & (d_ids < (hd_ids + 1) * HS)
    sel = jnp.where(in_head, 1.0, 0.0).astype(jnp.float32)     # (H, E)

    # Scale (C**-0.5, C = n_embd) folded into the K operand exactly once.
    scale = float(E) ** -0.5
    # Khat[(h, r), :] = scale * K[r, :] masked to head h's features; folding the
    # head axis onto the rows turns ALL heads' score matrices into ONE matmul.
    Khat = (K[None, :, :] * (scale * sel)[:, None, :]).reshape(H * R, E)
    S = lax.dot_general(Khat.astype(bf16), K.astype(bf16),
                        (((1,), (1,)), ((), ())),
                        preferred_element_type=jnp.float32)     # (H*R, R)
    S = S.reshape(H, R, R)

    # Combined causal + same-batch mask on fused (batch*seq) indices.
    log2_t = T.bit_length() - 1          # T is a power of two (asserted in wrapper)
    q_idx = lax.broadcasted_iota(jnp.int32, (R, R), 0)
    k_idx = lax.broadcasted_iota(jnp.int32, (R, R), 1)
    same_b = (q_idx >> log2_t) == (k_idx >> log2_t)
    causal = (k_idx & (T - 1)) <= (q_idx & (T - 1))
    valid = (same_b & causal)[None, :, :]                       # (1, R, R)

    S = jnp.where(valid, S, -jnp.inf)
    # softmax over dim=1 of the (B, T, T) scores == the query axis (axis 1 here).
    # Every column has >=1 unmasked entry (causal diagonal) so max is finite.
    S = S - jnp.max(S, axis=1, keepdims=True)
    P = jnp.exp(S)
    P = P / jnp.sum(P, axis=1, keepdims=True)   # exact divide (review item 5)

    # One matmul for every head's (P @ V); pick each head's feature block back
    # out with the same 0/1 selector and sum over the head axis.
    O = jnp.dot(P.reshape(H * R, R).astype(bf16), V.astype(bf16),
                preferred_element_type=jnp.float32)             # (H*R, E)
    attn = jnp.sum(O.reshape(H, R, E) * sel[:, None, :], axis=0)  # (R, E)

    sa = jnp.dot(attn.astype(bf16), wp, preferred_element_type=jnp.float32) + bp
    # TODO(synk): nn.Dropout (attention, proj, ffn) are eval-mode identities here.
    x1 = x0 + sa

    # ---- ln2 + feed-forward ----
    h2 = _layer_norm(x1, g2, be2)
    ff = jnp.dot(h2.astype(bf16), w1, preferred_element_type=jnp.float32) + b1
    ff = jnp.maximum(ff, 0.0)
    ff = jnp.dot(ff.astype(bf16), w2, preferred_element_type=jnp.float32) + b2

    o_ref[...] = x1 + ff


def pack_params(params):
    """Pack 12 parameter tensors into 2 kernel inputs.

    Runs ONCE on the host (plain numpy), outside any jitted path.
      * w_slab (bf16, (3E + 4E, 128)): rows 0:E   = [wk | wv]   (fused K/V)
                                       rows E:2E  = wp
                                       rows 2E:3E = w1
                                       rows 3E:   = w2
        All row offsets are multiples of 16 (bf16 sublane tile).
      * vec_slab (f32, (8, 128)): bp, g1, be1, g2, be2, b2 in lanes 0:E of
        rows 0..5; b1 in lanes 0:HIDDEN of row 6.
    """
    wk, wv, wp, bp, g1, be1, g2, be2, w1, b1, w2, b2 = params
    E, HID = N_EMBD, HIDDEN

    w = np.zeros((3 * E + HID, HID), np.float32)
    w[0:E, 0:2 * E] = np.concatenate([np.asarray(wk), np.asarray(wv)], axis=1)
    w[E:2 * E, 0:E] = np.asarray(wp)
    w[2 * E:3 * E, 0:HID] = np.asarray(w1)
    w[3 * E:3 * E + HID, 0:E] = np.asarray(w2)
    w_slab = jnp.asarray(w).astype(jnp.bfloat16)

    vec = np.zeros((8, HID), np.float32)
    for i, v in enumerate((bp, g1, be1, g2, be2, b2)):
        vec[i, :E] = np.asarray(v)
    vec[6, :HID] = np.asarray(b1)
    vec_slab = jnp.asarray(vec)
    return w_slab, vec_slab


@jax.jit
def transform_block(x, w_slab, vec_slab):
    B, T, E = x.shape
    assert E == N_EMBD and E % N_HEAD == 0
    assert T & (T - 1) == 0, "fused batch mask assumes power-of-two block_size"

    x2 = x.reshape(B * T, E)            # fold batch into the sublane axis

    kernel = partial(transform_block_kernel, batch=B, seq=T, n_head=N_HEAD)
    out2 = pl.pallas_call(
        kernel,
        out_shape=jax.ShapeDtypeStruct((B * T, E), jnp.float32),
        # No grid: single invocation, whole arrays resident in VMEM (~60 KB).
        in_specs=[pl.BlockSpec(memory_space=pltpu.MemorySpace.VMEM)] * 3,
        out_specs=pl.BlockSpec(memory_space=pltpu.MemorySpace.VMEM),
    )(x2, w_slab, vec_slab)
    return out2.reshape(B, T, E)


# ---- pure-JAX reference mirroring the PyTorch module (for the self-check) ----
def transform_block_ref(x, params):
    wk, wv, wp, bp, g1, be1, g2, be2, w1, b1, w2, b2 = params

    def ln(v, g, b):
        m = jnp.mean(v, axis=-1, keepdims=True)
        var = jnp.mean((v - m) ** 2, axis=-1, keepdims=True)
        return (v - m) / jnp.sqrt(var + EPS) * g + b

    B, T, C = x.shape
    h = ln(x, g1, be1)
    k_all = h @ wk
    v_all = h @ wv
    tril = jnp.tril(jnp.ones((T, T)))
    outs = []
    for hd in range(N_HEAD):
        lo = hd * HEAD_SIZE
        k = k_all[:, :, lo:lo + HEAD_SIZE]
        q = k                                            # q = self.key(x) quirk
        wei = jnp.einsum("btd,bsd->bts", q, k) * C ** -0.5
        wei = jnp.where(tril[None] == 0, -jnp.inf, wei)
        wei = jax.nn.softmax(wei, axis=1)                # dim=1 quirk
        v = v_all[:, :, lo:lo + HEAD_SIZE]
        outs.append(jnp.einsum("bts,bsd->btd", wei, v))
    attn = jnp.concatenate(outs, axis=-1)
    x1 = x + attn @ wp + bp
    h2 = ln(x1, g2, be2)
    ff = jnp.maximum(h2 @ w1 + b1, 0.0) @ w2 + b2
    return x1 + ff


def init_params(key):
    ks = jax.random.split(key, 12)
    s = 0.02
    wk = (jax.random.normal(ks[0], (N_EMBD, N_EMBD)) * s).astype(jnp.float32)
    wv = (jax.random.normal(ks[1], (N_EMBD, N_EMBD)) * s).astype(jnp.float32)
    wp = (jax.random.normal(ks[2], (N_EMBD, N_EMBD)) * s).astype(jnp.float32)
    bp = (jax.random.normal(ks[3], (N_EMBD,)) * s).astype(jnp.float32)
    g1 = (1.0 + 0.1 * jax.random.normal(ks[4], (N_EMBD,))).astype(jnp.float32)
    be1 = (0.1 * jax.random.normal(ks[5], (N_EMBD,))).astype(jnp.float32)
    g2 = (1.0 + 0.1 * jax.random.normal(ks[6], (N_EMBD,))).astype(jnp.float32)
    be2 = (0.1 * jax.random.normal(ks[7], (N_EMBD,))).astype(jnp.float32)
    w1 = (jax.random.normal(ks[8], (N_EMBD, HIDDEN)) * s).astype(jnp.float32)
    b1 = (jax.random.normal(ks[9], (HIDDEN,)) * s).astype(jnp.float32)
    w2 = (jax.random.normal(ks[10], (HIDDEN, N_EMBD)) * s).astype(jnp.float32)
    b2 = (jax.random.normal(ks[11], (N_EMBD,)) * s).astype(jnp.float32)
    return (wk, wv, wp, bp, g1, be1, g2, be2, w1, b1, w2, b2)


if __name__ == "__main__":
    key = jax.random.PRNGKey(0)
    kx, kp = jax.random.split(key)
    x = jax.random.normal(kx, (BATCH, BLOCK_SIZE, N_EMBD), dtype=jnp.float32)
    params = init_params(kp)

    # Parameter packing is done once here (host-side), NOT inside the jitted
    # per-call path (per the performance review).
    w_slab, vec_slab = pack_params(params)

    out = jax.block_until_ready(transform_block(x, w_slab, vec_slab))
    ref = transform_block_ref(x, params)

    # Tolerance 2e-2 accommodates the bf16 matmul operands (f32 accumulation)
    # requested by the perf review; the softmax reciprocal is exact again, and
    # all LayerNorm / softmax / elementwise math remains f32.
    np.testing.assert_allclose(np.asarray(out), np.asarray(ref),
                               rtol=2e-2, atol=2e-2)
    print("KERNEL_OK")
</pallas_src>

<mosaic_0001>
module attributes {stable_mosaic.version = 11 : i64} {
  func.func @transform_block_kernel(%arg0: memref<16x32xf32, #tpu.memory_space<vmem>>, %arg1: memref<224x128xbf16, #tpu.memory_space<vmem>>, %arg2: memref<8x128xf32, #tpu.memory_space<vmem>>, %arg3: memref<16x32xf32, #tpu.memory_space<vmem>>) attributes {dimension_semantics = [], scalar_prefetch = 0 : i64, scratch_operands = 0 : i64, tpu.core_type = #tpu.core_type<tc>} {
    %c0 = arith.constant 0 : index
    %c0_0 = arith.constant 0 : index
    %0 = vector.load %arg0[%c0, %c0_0] : memref<16x32xf32, #tpu.memory_space<vmem>>, vector<16x32xf32>
    %c0_1 = arith.constant 0 : index
    %c0_2 = arith.constant 0 : index
    %1 = vector.load %arg2[%c0_1, %c0_2] : memref<8x128xf32, #tpu.memory_space<vmem>>, vector<1x32xf32>
    %c1 = arith.constant 1 : index
    %c0_3 = arith.constant 0 : index
    %2 = vector.load %arg2[%c1, %c0_3] : memref<8x128xf32, #tpu.memory_space<vmem>>, vector<1x32xf32>
    %c2 = arith.constant 2 : index
    %c0_4 = arith.constant 0 : index
    %3 = vector.load %arg2[%c2, %c0_4] : memref<8x128xf32, #tpu.memory_space<vmem>>, vector<1x32xf32>
    %c3 = arith.constant 3 : index
    %c0_5 = arith.constant 0 : index
    %4 = vector.load %arg2[%c3, %c0_5] : memref<8x128xf32, #tpu.memory_space<vmem>>, vector<1x32xf32>
    %c4 = arith.constant 4 : index
    %c0_6 = arith.constant 0 : index
    %5 = vector.load %arg2[%c4, %c0_6] : memref<8x128xf32, #tpu.memory_space<vmem>>, vector<1x32xf32>
    %c5 = arith.constant 5 : index
    %c0_7 = arith.constant 0 : index
    %6 = vector.load %arg2[%c5, %c0_7] : memref<8x128xf32, #tpu.memory_space<vmem>>, vector<1x32xf32>
    %c6 = arith.constant 6 : index
    %c0_8 = arith.constant 0 : index
    %7 = vector.load %arg2[%c6, %c0_8] : memref<8x128xf32, #tpu.memory_space<vmem>>, vector<1x128xf32>
    %c0_9 = arith.constant 0 : index
    %c0_10 = arith.constant 0 : index
    %8 = vector.load %arg1[%c0_9, %c0_10] : memref<224x128xbf16, #tpu.memory_space<vmem>>, vector<32x64xbf16>
    %c32 = arith.constant 32 : index
    %c0_11 = arith.constant 0 : index
    %9 = vector.load %arg1[%c32, %c0_11] : memref<224x128xbf16, #tpu.memory_space<vmem>>, vector<32x32xbf16>
    %c64 = arith.constant 64 : index
    %c0_12 = arith.constant 0 : index
    %10 = vector.load %arg1[%c64, %c0_12] : memref<224x128xbf16, #tpu.memory_space<vmem>>, vector<32x128xbf16>
    %c96 = arith.constant 96 : index
    %c0_13 = arith.constant 0 : index
    %11 = vector.load %arg1[%c96, %c0_13] : memref<224x128xbf16, #tpu.memory_space<vmem>>, vector<128x32xbf16>
    %cst = arith.constant dense<0.000000e+00> : vector<16xf32>
    %12 = vector.multi_reduction <add>, %0, %cst [1] : vector<16x32xf32> to vector<16xf32>
    %13 = vector.shape_cast %12 : vector<16xf32> to vector<16x1xf32>
    %cst_14 = arith.constant 3.200000e+01 : f32
    %14 = vector.broadcast %cst_14 : f32 to vector<16x1xf32>
    %15 = arith.divf %13, %14 : vector<16x1xf32>
    %16 = vector.broadcast %15 : vector<16x1xf32> to vector<16x32xf32>
    %17 = arith.subf %0, %16 : vector<16x32xf32>
    %18 = arith.mulf %17, %17 : vector<16x32xf32>
    %cst_15 = arith.constant dense<0.000000e+00> : vector<16xf32>
    %19 = vector.multi_reduction <add>, %18, %cst_15 [1] : vector<16x32xf32> to vector<16xf32>
    %20 = vector.shape_cast %19 : vector<16xf32> to vector<16x1xf32>
    %cst_16 = arith.constant 3.200000e+01 : f32
    %21 = vector.broadcast %cst_16 : f32 to vector<16x1xf32>
    %22 = arith.divf %20, %21 : vector<16x1xf32>
    %23 = vector.broadcast %15 : vector<16x1xf32> to vector<16x32xf32>
    %24 = arith.subf %0, %23 : vector<16x32xf32>
    %cst_17 = arith.constant 9.99999974E-6 : f32
    %25 = vector.broadcast %cst_17 : f32 to vector<16x1xf32>
    %26 = arith.addf %22, %25 : vector<16x1xf32>
    %27 = math.rsqrt %26 : vector<16x1xf32>
    %28 = vector.broadcast %27 : vector<16x1xf32> to vector<16x32xf32>
    %29 = arith.mulf %24, %28 : vector<16x32xf32>
    %30 = vector.broadcast %2 : vector<1x32xf32> to vector<16x32xf32>
    %31 = arith.mulf %29, %30 : vector<16x32xf32>
    %32 = vector.broadcast %3 : vector<1x32xf32> to vector<16x32xf32>
    %33 = arith.addf %31, %32 : vector<16x32xf32>
    %34 = arith.truncf %33 : vector<16x32xf32> to vector<16x32xbf16>
    %cst_18 = arith.constant dense<0.000000e+00> : vector<16x64xf32>
    %35 = tpu.matmul %34, %8, %cst_18 {dimension_numbers = #tpu.dot_dimension_numbers<[1], [0], [0], [1], [0, 0, 1, 1], [], []>} : vector<16x32xbf16>, vector<32x64xbf16>, vector<16x64xf32> -> vector<16x64xf32>
    %36 = vector.extract_strided_slice %35 {offsets = [0, 0], sizes = [16, 32], strides = [1, 1]} : vector<16x64xf32> to vector<16x32xf32>
    %37 = vector.extract_strided_slice %35 {offsets = [0, 32], sizes = [16, 32], strides = [1, 1]} : vector<16x64xf32> to vector<16x32xf32>
    %38 = tpu.iota {dimensions = array<i32: 0>} : vector<4x32xi32>
    %39 = tpu.iota {dimensions = array<i32: 1>} : vector<4x32xi32>
    %c8_i32 = arith.constant 8 : i32
    %40 = vector.broadcast %c8_i32 : i32 to vector<4x32xi32>
    %41 = arith.muli %38, %40 : vector<4x32xi32>
    %42 = arith.cmpi sge, %39, %41 : vector<4x32xi32>
    %c1_i32 = arith.constant 1 : i32
    %43 = vector.broadcast %c1_i32 : i32 to vector<4x32xi32>
    %44 = arith.addi %38, %43 : vector<4x32xi32>
    %c8_i32_19 = arith.constant 8 : i32
    %45 = vector.broadcast %c8_i32_19 : i32 to vector<4x32xi32>
    %46 = arith.muli %44, %45 : vector<4x32xi32>
    %47 = arith.cmpi slt, %39, %46 : vector<4x32xi32>
    %48 = arith.andi %42, %47 : vector<4x32xi1>
    %cst_20 = arith.constant 1.000000e+00 : f32
    %cst_21 = arith.constant 0.000000e+00 : f32
    %49 = vector.broadcast %cst_20 : f32 to vector<4x32xf32>
    %50 = vector.broadcast %cst_21 : f32 to vector<4x32xf32>
    %51 = arith.select %48, %49, %50 : vector<4x32xi1>, vector<4x32xf32>
    %52 = vector.shape_cast %36 : vector<16x32xf32> to vector<1x16x32xf32>
    %cst_22 = arith.constant 0.176776692 : f32
    %53 = vector.broadcast %cst_22 : f32 to vector<4x32xf32>
    %54 = arith.mulf %53, %51 : vector<4x32xf32>
    %55 = vector.shape_cast %54 : vector<4x32xf32> to vector<4x1x32xf32>
    %56 = vector.broadcast %52 : vector<1x16x32xf32> to vector<4x16x32xf32>
    %57 = vector.broadcast %55 : vector<4x1x32xf32> to vector<4x16x32xf32>
    %58 = arith.mulf %56, %57 : vector<4x16x32xf32>
    %59 = vector.shape_cast %58 : vector<4x16x32xf32> to vector<64x32xf32>
    %60 = arith.truncf %59 : vector<64x32xf32> to vector<64x32xbf16>
    %61 = arith.truncf %36 : vector<16x32xf32> to vector<16x32xbf16>
    %cst_23 = arith.constant dense<0.000000e+00> : vector<64x16xf32>
    %62 = tpu.matmul %60, %61, %cst_23 {dimension_numbers = #tpu.dot_dimension_numbers<[1], [1], [0], [0], [0, 0, 1, 0], [], []>} : vector<64x32xbf16>, vector<16x32xbf16>, vector<64x16xf32> -> vector<64x16xf32>
    %63 = vector.shape_cast %62 : vector<64x16xf32> to vector<4x16x16xf32>
    %64 = tpu.iota {dimensions = array<i32: 0>} : vector<16x16xi32>
    %65 = tpu.iota {dimensions = array<i32: 1>} : vector<16x16xi32>
    %c3_i32 = arith.constant 3 : i32
    %66 = vector.broadcast %c3_i32 : i32 to vector<16x16xi32>
    %67 = arith.shrsi %64, %66 : vector<16x16xi32>
    %c3_i32_24 = arith.constant 3 : i32
    %68 = vector.broadcast %c3_i32_24 : i32 to vector<16x16xi32>
    %69 = arith.shrsi %65, %68 : vector<16x16xi32>
    %70 = arith.cmpi eq, %67, %69 : vector<16x16xi32>
    %c7_i32 = arith.constant 7 : i32
    %71 = vector.broadcast %c7_i32 : i32 to vector<16x16xi32>
    %72 = arith.andi %65, %71 : vector<16x16xi32>
    %c7_i32_25 = arith.constant 7 : i32
    %73 = vector.broadcast %c7_i32_25 : i32 to vector<16x16xi32>
    %74 = arith.andi %64, %73 : vector<16x16xi32>
    %75 = arith.cmpi sle, %72, %74 : vector<16x16xi32>
    %76 = arith.andi %70, %75 : vector<16x16xi1>
    %77 = vector.shape_cast %76 : vector<16x16xi1> to vector<1x16x16xi1>
    %cst_26 = arith.constant 0xFF800000 : f32
    %78 = vector.shape_cast %77 : vector<1x16x16xi1> to vector<1x16x16xi1>
    %79 = vector.broadcast %78 : vector<1x16x16xi1> to vector<4x16x16xi1>
    %80 = vector.broadcast %cst_26 : f32 to vector<4x16x16xf32>
    %81 = arith.select %79, %63, %80 : vector<4x16x16xi1>, vector<4x16x16xf32>
    %cst_27 = arith.constant dense<0xFF800000> : vector<4x16xf32>
    %82 = vector.multi_reduction <maximumf>, %81, %cst_27 [1] : vector<4x16x16xf32> to vector<4x16xf32>
    %83 = vector.shape_cast %82 : vector<4x16xf32> to vector<4x1x16xf32>
    %84 = vector.broadcast %83 : vector<4x1x16xf32> to vector<4x16x16xf32>
    %85 = arith.subf %81, %84 : vector<4x16x16xf32>
    %86 = math.exp %85 : vector<4x16x16xf32>
    %cst_28 = arith.constant dense<0.000000e+00> : vector<4x16xf32>
    %87 = vector.multi_reduction <add>, %86, %cst_28 [1] : vector<4x16x16xf32> to vector<4x16xf32>
    %88 = vector.shape_cast %87 : vector<4x16xf32> to vector<4x1x16xf32>
    %89 = vector.broadcast %88 : vector<4x1x16xf32> to vector<4x16x16xf32>
    %90 = arith.divf %86, %89 : vector<4x16x16xf32>
    %91 = vector.shape_cast %90 : vector<4x16x16xf32> to vector<64x16xf32>
    %92 = arith.truncf %91 : vector<64x16xf32> to vector<64x16xbf16>
    %93 = arith.truncf %37 : vector<16x32xf32> to vector<16x32xbf16>
    %cst_29 = arith.constant dense<0.000000e+00> : vector<64x32xf32>
    %94 = tpu.matmul %92, %93, %cst_29 {dimension_numbers = #tpu.dot_dimension_numbers<[1], [0], [0], [1], [0, 0, 1, 1], [], []>} : vector<64x16xbf16>, vector<16x32xbf16>, vector<64x32xf32> -> vector<64x32xf32>
    %95 = vector.shape_cast %94 : vector<64x32xf32> to vector<4x16x32xf32>
    %96 = vector.shape_cast %51 : vector<4x32xf32> to vector<4x1x32xf32>
    %97 = vector.broadcast %96 : vector<4x1x32xf32> to vector<4x16x32xf32>
    %98 = arith.mulf %95, %97 : vector<4x16x32xf32>
    %cst_30 = arith.constant dense<0.000000e+00> : vector<16x32xf32>
    %99 = vector.multi_reduction <add>, %98, %cst_30 [0] : vector<4x16x32xf32> to vector<16x32xf32>
    %100 = arith.truncf %99 : vector<16x32xf32> to vector<16x32xbf16>
    %cst_31 = arith.constant dense<0.000000e+00> : vector<16x32xf32>
    %101 = tpu.matmul %100, %9, %cst_31 {dimension_numbers = #tpu.dot_dimension_numbers<[1], [0], [0], [1], [0, 0, 1, 1], [], []>} : vector<16x32xbf16>, vector<32x32xbf16>, vector<16x32xf32> -> vector<16x32xf32>
    %102 = vector.broadcast %1 : vector<1x32xf32> to vector<16x32xf32>
    %103 = arith.addf %101, %102 : vector<16x32xf32>
    %104 = arith.addf %0, %103 : vector<16x32xf32>
    %cst_32 = arith.constant dense<0.000000e+00> : vector<16xf32>
    %105 = vector.multi_reduction <add>, %104, %cst_32 [1] : vector<16x32xf32> to vector<16xf32>
    %106 = vector.shape_cast %105 : vector<16xf32> to vector<16x1xf32>
    %cst_33 = arith.constant 3.200000e+01 : f32
    %107 = vector.broadcast %cst_33 : f32 to vector<16x1xf32>
    %108 = arith.divf %106, %107 : vector<16x1xf32>
    %109 = vector.broadcast %108 : vector<16x1xf32> to vector<16x32xf32>
    %110 = arith.subf %104, %109 : vector<16x32xf32>
    %111 = arith.mulf %110, %110 : vector<16x32xf32>
    %cst_34 = arith.constant dense<0.000000e+00> : vector<16xf32>
    %112 = vector.multi_reduction <add>, %111, %cst_34 [1] : vector<16x32xf32> to vector<16xf32>
    %113 = vector.shape_cast %112 : vector<16xf32> to vector<16x1xf32>
    %cst_35 = arith.constant 3.200000e+01 : f32
    %114 = vector.broadcast %cst_35 : f32 to vector<16x1xf32>
    %115 = arith.divf %113, %114 : vector<16x1xf32>
    %116 = vector.broadcast %108 : vector<16x1xf32> to vector<16x32xf32>
    %117 = arith.subf %104, %116 : vector<16x32xf32>
    %cst_36 = arith.constant 9.99999974E-6 : f32
    %118 = vector.broadcast %cst_36 : f32 to vector<16x1xf32>
    %119 = arith.addf %115, %118 : vector<16x1xf32>
    %120 = math.rsqrt %119 : vector<16x1xf32>
    %121 = vector.broadcast %120 : vector<16x1xf32> to vector<16x32xf32>
    %122 = arith.mulf %117, %121 : vector<16x32xf32>
    %123 = vector.broadcast %4 : vector<1x32xf32> to vector<16x32xf32>
    %124 = arith.mulf %122, %123 : vector<16x32xf32>
    %125 = vector.broadcast %5 : vector<1x32xf32> to vector<16x32xf32>
    %126 = arith.addf %124, %125 : vector<16x32xf32>
    %127 = arith.truncf %126 : vector<16x32xf32> to vector<16x32xbf16>
    %cst_37 = arith.constant dense<0.000000e+00> : vector<16x128xf32>
    %128 = tpu.matmul %127, %10, %cst_37 {dimension_numbers = #tpu.dot_dimension_numbers<[1], [0], [0], [1], [0, 0, 1, 1], [], []>} : vector<16x32xbf16>, vector<32x128xbf16>, vector<16x128xf32> -> vector<16x128xf32>
    %129 = vector.broadcast %7 : vector<1x128xf32> to vector<16x128xf32>
    %130 = arith.addf %128, %129 : vector<16x128xf32>
    %cst_38 = arith.constant 0.000000e+00 : f32
    %131 = vector.broadcast %cst_38 : f32 to vector<16x128xf32>
    %132 = arith.maximumf %130, %131 : vector<16x128xf32>
    %133 = arith.truncf %132 : vector<16x128xf32> to vector<16x128xbf16>
    %cst_39 = arith.constant dense<0.000000e+00> : vector<16x32xf32>
    %134 = tpu.matmul %133, %11, %cst_39 {dimension_numbers = #tpu.dot_dimension_numbers<[1], [0], [0], [1], [0, 0, 1, 1], [], []>} : vector<16x128xbf16>, vector<128x32xbf16>, vector<16x32xf32> -> vector<16x32xf32>
    %135 = vector.broadcast %6 : vector<1x32xf32> to vector<16x32xf32>
    %136 = arith.addf %134, %135 : vector<16x32xf32>
    %137 = arith.addf %104, %136 : vector<16x32xf32>
    %c0_40 = arith.constant 0 : index
    %c0_41 = arith.constant 0 : index
    %138 = vector.load %arg3[%c0_40, %c0_41] : memref<16x32xf32, #tpu.memory_space<vmem>>, vector<16x32xf32>
    tpu.vector_store %arg3[%c0_40, %c0_41], %137 {strides = array<i32>} : memref<16x32xf32, #tpu.memory_space<vmem>>, vector<16x32xf32>,
    return
  }
}

</mosaic_0001>

<bundles_post_ra>
// kernel: transform_block.1
= control target key start
LH: loop header
LB: loop body
LE: loop exit
PB: predicated region body
PF: predicated region fallthrough
CT: control target
= control target key end

     0   :  { %8 = vsyncpa [#allocation3], 0  ;;  %s1393_s0 = inlined_call_operand.hbm [shape: f32[16,32], index: 0, kind: input, shape index: {}]   ;;  %s1394_s1 = inlined_call_operand.hbm [shape: bf16[224,128], index: 1, kind: input, shape index: {}]   ;;  %s1395_s2 = inlined_call_operand.vmem [shape: f32[8,128], index: 2, kind: input, shape index: {}]   ;;  %s1396_s3 = inlined_call_operand.hbm [shape: f32[16,32], index: 3, kind: output, shape index: {}]  }
   0x1   :  { %9 = vsyncpa [#allocation6], 0 }
   0x2   :  { %10 = vsyncpa [#allocation4], 0  ;;  %s1148_s12 = smov [#allocation2]   ;;  %s1076_s16 = scalar_lea.hbm %s1393_s0, 256 }
   0x3   :  { %s16_s13 = sshll.u32 %s1148_s12, 4  ;;  %p1077_p0 = scmp.ne.s32.totalorder %s1393_s0, %s1076_s16  ;;  %s17_s13 = int_to_ptr.vmem [resolvable:$true] %s16_s13 }
   0x4   :  { %p1080_p1 = scmp.lt.u32.totalorder %s1076_s16, %s1393_s0 }
   0x6   :  { %p1082_p2 = pnand %p1080_p1, %p1077_p0 }
   0x8   :  { %1085 = shalt.err (!%p1082_p2)
}
   0x9   :  { %s1086_s21 = scalar_lea.vmem %s17_s13, 256  ;;  %p1091_p4 = scmp.lt.s32.totalorder %s17_s13, %s17_s13 }
   0xa   :  { %p1087_p3 = scmp.ne.s32.totalorder %s17_s13, %s1086_s21  ;;  %p1092_p5 = scmp.lt.s32.totalorder %s1086_s21, %s1086_s21 }
   0xc   :  { %p1093_p6 = por %p1092_p5, %p1091_p4 }
   0xe   :  { %p1094_p7 = pnand %p1093_p6, %p1087_p3 }
  0x10   :  { %1097 = shalt.err (!%p1094_p7)
}
  0x11   :  { %s1149_s22 = smov 128   ;;  %s1150_s23 = smov 8  }
  0x12   :  { %22 = dma.hbm_to_vmem [thread:$0]  %s1393_s0, 256, %s17_s13, [#allocation3], %s1149_s22, %s1149_s22, %s1150_s23  }
  0x13   :  { %s1151_s26 = smov [#allocation5]   ;;  %s1098_s30 = scalar_lea.hbm %s1394_s1, 1792 }
  0x14   :  { %s28_s27 = sshll.u32 %s1151_s26, 4  ;;  %p1099_p8 = scmp.ne.s32.totalorder %s1394_s1, %s1098_s30  ;;  %s29_s27 = int_to_ptr.vmem [resolvable:$true] %s28_s27 }
  0x15   :  { %p1102_p9 = scmp.lt.u32.totalorder %s1098_s30, %s1394_s1 }
  0x17   :  { %p1104_p10 = pnand %p1102_p9, %p1099_p8 }
  0x19   :  { %1107 = shalt.err (!%p1104_p10)
}
  0x1a   :  { %s1108_s8 = scalar_lea.vmem %s29_s27, 1792  ;;  %p1113_p12 = scmp.lt.s32.totalorder %s29_s27, %s29_s27 }
  0x1b   :  { %p1109_p11 = scmp.ne.s32.totalorder %s29_s27, %s1108_s8  ;;  %p1114_p13 = scmp.lt.s32.totalorder %s1108_s8, %s1108_s8 }
  0x1d   :  { %p1115_p0 = por %p1114_p13, %p1113_p12 }
  0x1f   :  { %p1116_p1 = pnand %p1115_p0, %p1109_p11 }
  0x21   :  { %1119 = shalt.err (!%p1116_p1)
}
  0x22   :  { %s1152_s0 = smov 64   ;;  %s1153_s9 = smov 4  }
  0x23   :  { %34 = dma.hbm_to_vmem [thread:$0]  %s1394_s1, 1792, %s29_s27, [#allocation6], %s1152_s0, %s1152_s0, %s1153_s9  }
  0x24   :  { %1142 = dma.done.wait [#allocation3], 256  }
  0x25   :  { %1143 = vsyncadd [#allocation3], 4294967040 }
  0x26   :  { %1144 = dma.done.wait [#allocation6], 1792  }
  0x27   :  { %1145 = vsyncadd [#allocation6], 4294965504  ;;  %vm81_vm0 = vcmask 261120   ;;  %v1206_v0 = vld [vmem:[#allocation2] sm:$0xff]  ;;  %v1208_v1 = vld [vmem:[#allocation2 + $0x8] sm:$0xff]  ;;  %v1154_v15 = vmov 0.0   ;;  %v178_v34 = vlaneseq }
  0x28   :  { %v82_v2 = vsel %vm81_vm0, %v1206_v0, 0.0  ;;  %v85_v3 = vsel %vm81_vm0, %v1208_v1, 0.0  ;;  %v1030_v14 = vld [vmem:[#allocation5] sm:$0xff]   ;;  %954 = vmatprep.subr.bf16.mxu0 %v1154_v15  ;;  %v1031_v16 = vld [vmem:[#allocation5 + $0x8] sm:$0xff]   ;;  %vm1155_vm1 = vmmov 0   ;;  %s1157_s15 = smov 96  }
  0x29   :  { %83 = vadd.xlane.f32.xlu0 %v82_v2  ;;  %955 = vmatpush3.bf16.msra.mxu0 %v1030_v14  ;;  %v894_v25 = vld [vmem:[%s1395_s2 + $0x1] ss:$0 sm:$0xff]  ;;  %v895_v29 = vld [vmem:[%s1395_s2 + $0x2] ss:$0 sm:$0xff]  ;;  %v1229_v35 = vshrl.u32 %v178_v34, 7  ;;  %v1232_v37 = vand.u32 127, %v178_v34 }
  0x2a   :  { %958 = vmatprep.mubr.msk.bf16.mxu0 %vm1155_vm1, %v1154_v15  ;;  %956 = vmatprep.subr.bf16.mxu0 %v1154_v15  ;;  %v1156_v40 = vmov 1966171168   ;;  %vm353_vm11 = vcmask 130048   ;;  %s1158_s28 = smov [#allocation7]  }
  0x2b   :  { %v184_v36 = vadd.s32 1, %v1229_v35  ;;  %v182_v38 = vmul.u32 8, %v1229_v35  ;;  %v192_v41 = vunpack.c.l.s4 %v1156_v40  ;;  %v1248_v51 = vsub.s32 0, %v1229_v35  ;;  %s881_s29 = sshll.u32 %s1158_s28, 4  ;;  %s882_s29 = int_to_ptr.vmem [resolvable:$true] %s881_s29 }
  0x2c   :  { %v328_v14 = vadd.s32 8, %v1229_v35  ;;  %s1120_s30 = scalar_lea.vmem %s882_s29, 256  ;;  %p1125_p3 = scmp.lt.s32.totalorder %s882_s29, %s882_s29 }
  0x2d   :  { %86 = vadd.xlane.f32.xlu0 %v85_v3  ;;  %957 = vmatpush3.bf16.msra.mxu0 %v1031_v16  ;;  %v185_v39 = vmul.u32 8, %v184_v36  ;;  %vm183_vm2 = vcmp.ge.s32.totalorder %v1232_v37, %v182_v38  ;;  %v193_v42 = vunpack.c.0.s8 %v192_v41  ;;  %v329_v16 = vshra.s32 %v1229_v35, 3  ;;  %p1121_p2 = scmp.ne.s32.totalorder %s882_s29, %s1120_s30  ;;  %p1126_p4 = scmp.lt.s32.totalorder %s1120_s30, %s1120_s30 }
  0x2f   :  { %vm186_vm3 = vcmp.lt.s32.totalorder %v1232_v37, %v185_v39  ;;  %v1242_v45 = vsub.s32 %v193_v42, %v1229_v35  ;;  %p1127_p5 = por %p1126_p4, %p1125_p3 }
  0x30   :  { %vm187_vm4 = vmand %vm183_vm2, %vm186_vm3 }
  0x31   :  { %v1238_v43 = vsel %vm187_vm4, 1.0, %v1154_v15  ;;  %p1128_p6 = pnand %p1127_p5, %p1121_p2 }
  0x32   :  { %v189_v44 = vmul.f32 0.17677669, %v1238_v43 }
  0x34   :  { %v197_v46 = vrot.slane %v189_v44, %v1242_v45 }
  0x36   :  { %v198_v47 = vcombine.high %v197_v46, %v197_v46  ;;  %v205_v49 = vrot.slane %v197_v46, %v1242_v45 }
  0x38   :  { %v212_v48 = vrot.slane %v198_v47, %v1242_v45  ;;  %v213_v52 = vcombine.high %v205_v49, %v205_v49  ;;  %v218_v55 = vrot.slane %v205_v49, %v1248_v51 }
  0x3a   :  { %v214_v50 = vcombine.high %v212_v48, %v212_v48  ;;  %v222_v53 = vrot.slane %v212_v48, %v1248_v51  ;;  %v226_v57 = vrot.slane %v213_v52, %v1248_v51 }
  0x3c   :  { %v230_v54 = vrot.slane %v214_v50, %v1248_v51 }
  0xb6   :  { %v84_v4 = vpop.xlane.xlu0 %83 }
  0xb7   :  { %v89_v5 = vmul.f32 0.03125, %v84_v4 }
  0xb9   :  { %v91_v6 = vsub.f32 %v1206_v0, %v89_v5 }
  0xba   :  { %v87_v7 = vpop.xlane.xlu0 %86 }
  0xbb   :  { %v90_v8 = vmul.f32 0.03125, %v87_v7  ;;  %v93_v9 = vmul.f32 %v91_v6, %v91_v6 }
  0xbd   :  { %v92_v10 = vsub.f32 %v1208_v1, %v90_v8  ;;  %v95_v11 = vsel %vm81_vm0, %v93_v9, 0.0 }
  0xbe   :  { %96 = vadd.xlane.f32.xlu1 %v95_v11 }
  0xbf   :  { %v94_v12 = vmul.f32 %v92_v10, %v92_v10 }
  0xc1   :  { %v98_v13 = vsel %vm81_vm0, %v94_v12, 0.0 }
  0xc2   :  { %99 = vadd.xlane.f32.xlu1 %v98_v13 }
 0x14b   :  { %v97_v17 = vpop.xlane.xlu1 %96 }
 0x14c   :  { %v101_v18 = vmul.f32 0.03125, %v97_v17  ;;  %v331_v17 = vshra.s32 %v1232_v37, 3 }
 0x14e   :  { %v103_v19 = vadd.f32 1e-05, %v101_v18  ;;  %v334_v18 = vand.u32 7, %v1232_v37  ;;  %vm332_vm5 = vcmp.eq.s32.totalorder %v329_v16, %v331_v17 }
 0x14f   :  { %v100_v20 = vpop.xlane.xlu1 %99 }
 0x150   :  { %1044 = vrsqrt.f32 %v103_v19  ;;  %v102_v21 = vmul.f32 0.03125, %v100_v20  ;;  %v335_v19 = vand.u32 7, %v1229_v35  ;;  %v330_v20 = vshra.s32 %v328_v14, 3 }
 0x152   :  { %v104_v22 = vadd.f32 1e-05, %v102_v21  ;;  %v336_v21 = vand.u32 7, %v328_v14  ;;  %vm337_vm6 = vcmp.le.s32.totalorder %v334_v18, %v335_v19  ;;  %vm333_vm7 = vcmp.eq.s32.totalorder %v330_v20, %v331_v17 }
 0x153   :  { %vm1269_vm9 = vmand %vm332_vm5, %vm337_vm6 }
 0x154   :  { %1046 = vrsqrt.f32 %v104_v22  ;;  %vm338_vm8 = vcmp.le.s32.totalorder %v334_v18, %v336_v21 }
 0x155   :  { %vm1273_vm10 = vmand %vm333_vm7, %vm338_vm8 }
 0x15a   :  { %v1045_v23 = vpop.eup %1044 }
 0x15b   :  { %v107_v24 = vmul.f32 %v1045_v23, %v91_v6 }
 0x15d   :  { %v113_v28 = vmul.f32 %v894_v25, %v107_v24 }
 0x15e   :  { %v1047_v26 = vpop.eup %1046 }
 0x15f   :  { %v108_v27 = vmul.f32 %v1047_v26, %v92_v10  ;;  %v119_v31 = vadd.f32 %v895_v29, %v113_v28 }
 0x161   :  { %v114_v30 = vmul.f32 %v894_v25, %v108_v27 }
 0x163   :  { %v120_v32 = vadd.f32 %v895_v29, %v114_v30 }
 0x165   :  { %v121_v33 = vpack.c.bf16 %v120_v32, %v119_v31 }
 0x167   :  { %959 = vmatmul.mubr.msk.bf16.vlgmr.msra.gmra.mrb[0].mxu0 %vm81_vm0, %v121_v33 }
 0x23a   :  { %v171_v56 = vpop.f32.mrb[0].mxu0 }
 0x23b   :  { %v960_v58 = vpop.f32.mrb[1].mxu0  ;;  %v237_v59 = vmul.f32 %v222_v53, %v171_v56  ;;  %v241_v60 = vmul.f32 %v230_v54, %v171_v56  ;;  %v235_v62 = vmul.f32 %v218_v55, %v171_v56  ;;  %v239_v6 = vmul.f32 %v226_v57, %v171_v56 }
 0x23c   :  { %v174_v61 = vpop.f32.mrb[2].mxu0 }
 0x23d   :  { %v238_v63 = vmul.f32 %v222_v53, %v174_v61  ;;  %v242_v2 = vmul.f32 %v230_v54, %v174_v61  ;;  %v961_v3 = vpop.f32.mrb[3].mxu0  ;;  %v247_v4 = vpack.c.bf16 %v174_v61, %v171_v56  ;;  %v236_v5 = vmul.f32 %v218_v55, %v174_v61 }
 0x23e   :  { %v240_v7 = vmul.f32 %v226_v57, %v174_v61 }
 0x23f   :  { %467 = vrot.lane.b32.xlu0 %v247_v4, %s1157_s15  ;;  %1018 = vmatprep.subr.msk.bf16.mxu1 %vm81_vm0, %v247_v4  ;;  %v261_v8 = vsel %vm81_vm0, %v247_v4, 0  ;;  %v243_v9 = vpack.c.bf16 %v236_v5, %v235_v62  ;;  %v244_v10 = vpack.c.bf16 %v238_v63, %v237_v59  ;;  %v246_v11 = vpack.c.bf16 %v242_v2, %v241_v60 }
 0x240   :  { %963 = vmatpush3.bf16.xpose.msra.mxu1 %v261_v8  ;;  %v245_v12 = vpack.c.bf16 %v240_v7, %v239_v6 }
 0x241   :  { %964 = vmatprep.mubr.msk.bf16.mxu1 %vm81_vm0, %v243_v9  ;;  %998 = vmatprep.subr.bf16.mxu1 %v1154_v15 }
 0x247   :  { %965 = vmatmul.mubr.msk.bf16.vlgmr.msra.gmra.mrb[0].mxu1 %vm81_vm0, %v244_v10 }
 0x248   :  { %968 = vmatprep.mubr.msk.bf16.mxu1 %vm81_vm0, %v245_v12 }
 0x24f   :  { %969 = vmatmul.mubr.msk.bf16.gmra.mrb[4].mxu1 %vm81_vm0, %v246_v11 }
 0x250   :  { %1014 = vmatprep.mubr.msk.bf16.mxu1 %vm1155_vm1, %v1154_v15 }
 0x2b1   :  { %v468_v13 = vpop.permute.xlu0 %467 }
 0x2b2   :  { %972 = vmatprep.subr.bf16.mxu0 %v468_v13 }
 0x2b3   :  { %973 = vmatpush3.bf16.msra.mxu0 %v468_v13 }
 0x2b4   :  { %982 = vmatprep.subr.bf16.mxu0 %v1154_v15 }
 0x31a   :  { %v966_v23 = vpop.f32.mrb[0].mxu1 }
 0x31b   :  { %v347_v25 = vsel %vm1269_vm9, %v966_v23, -inf  ;;  %v297_v26 = vpop.f32.mrb[1].mxu1 }
 0x31c   :  { %v345_v27 = vsel %vm1269_vm9, %v297_v26, -inf  ;;  %v967_v28 = vpop.f32.mrb[2].mxu1  ;;  %v363_v31 = vsel %vm353_vm11, %v347_v25, -inf }
 0x31d   :  { %v348_v29 = vsel %vm1273_vm10, %v967_v28, -inf  ;;  %v300_v30 = vpop.f32.mrb[3].mxu1  ;;  %v354_v34 = vsel %vm353_vm11, %v345_v27, -inf }
 0x31e   :  { %v364_v32 = vsel %vm353_vm11, %v348_v29, -inf  ;;  %v346_v33 = vsel %vm1273_vm10, %v300_v30, -inf }
 0x31f   :  { %v365_v35 = vmax.f32 %v363_v31, %v364_v32  ;;  %v355_v36 = vsel %vm353_vm11, %v346_v33, -inf }
 0x320   :  { %v356_v37 = vmax.f32 %v354_v34, %v355_v36 }
 0x321   :  { %v366_v38 = vrot.slane %v365_v35, 4 }
 0x322   :  { %v357_v39 = vrot.slane %v356_v37, 4  ;;  %v970_v40 = vpop.f32.mrb[4].mxu1 }
 0x323   :  { %v367_v41 = vmax.f32 %v365_v35, %v366_v38  ;;  %v351_v42 = vsel %vm1269_vm9, %v970_v40, -inf  ;;  %v313_v44 = vpop.f32.mrb[5].mxu1 }
 0x324   :  { %v358_v46 = vmax.f32 %v356_v37, %v357_v39  ;;  %v349_v47 = vsel %vm1269_vm9, %v313_v44, -inf  ;;  %v971_v48 = vpop.f32.mrb[6].mxu1  ;;  %v381_v54 = vsel %vm353_vm11, %v351_v42, -inf }
 0x325   :  { %v368_v49 = vrot.slane %v367_v41, 2  ;;  %v352_v50 = vsel %vm1273_vm10, %v971_v48, -inf  ;;  %v316_v52 = vpop.f32.mrb[7].mxu1  ;;  %v372_v58 = vsel %vm353_vm11, %v349_v47, -inf }
 0x326   :  { %v359_v53 = vrot.slane %v358_v46, 2  ;;  %v382_v55 = vsel %vm353_vm11, %v352_v50, -inf  ;;  %v350_v56 = vsel %vm1273_vm10, %v316_v52, -inf }
 0x327   :  { %v369_v57 = vmax.f32 %v367_v41, %v368_v49  ;;  %v383_v59 = vmax.f32 %v381_v54, %v382_v55  ;;  %v373_v60 = vsel %vm353_vm11, %v350_v56, -inf }
 0x328   :  { %v360_v61 = vmax.f32 %v358_v46, %v359_v53  ;;  %v374_v62 = vmax.f32 %v372_v58, %v373_v60 }
 0x329   :  { %v370_v63 = vrot.slane %v369_v57, 1  ;;  %v384_v2 = vrot.slane %v383_v59, 4 }
 0x32a   :  { %v361_v3 = vrot.slane %v360_v61, 1  ;;  %v375_v4 = vrot.slane %v374_v62, 4 }
 0x32b   :  { %v371_v5 = vmax.f32 %v369_v57, %v370_v63  ;;  %v385_v6 = vmax.f32 %v383_v59, %v384_v2 }
 0x32c   :  { %v362_v7 = vmax.f32 %v360_v61, %v361_v3  ;;  %v376_v8 = vmax.f32 %v374_v62, %v375_v4 }
 0x32d   :  { %v392_v9 = vsub.f32 %v347_v25, %v371_v5  ;;  %v393_v10 = vsub.f32 %v348_v29, %v371_v5  ;;  %v386_v11 = vrot.slane %v385_v6, 2 }
 0x32e   :  { %v390_v12 = vsub.f32 %v345_v27, %v362_v7  ;;  %v391_v13 = vsub.f32 %v346_v33, %v362_v7  ;;  %v377_v14 = vrot.slane %v376_v8, 2 }
 0x32f   :  { %v402_v16 = vmul.f32 1.442695, %v392_v9  ;;  %v404_v17 = vmul.f32 1.442695, %v393_v10  ;;  %v387_v18 = vmax.f32 %v385_v6, %v386_v11 }
 0x330   :  { %v398_v19 = vmul.f32 1.442695, %v390_v12  ;;  %v400_v20 = vmul.f32 1.442695, %v391_v13  ;;  %v378_v21 = vmax.f32 %v376_v8, %v377_v14 }
 0x331   :  { %1048 = vpow2.f32 %v402_v16  ;;  %v388_v22 = vrot.slane %v387_v18, 1 }
 0x332   :  { %1050 = vpow2.f32 %v404_v17  ;;  %v379_v23 = vrot.slane %v378_v21, 1 }
 0x333   :  { %1052 = vpow2.f32 %v398_v19  ;;  %v389_v24 = vmax.f32 %v387_v18, %v388_v22 }
 0x334   :  { %1054 = vpow2.f32 %v400_v20  ;;  %v380_v26 = vmax.f32 %v378_v21, %v379_v23 }
 0x335   :  { %v396_v25 = vsub.f32 %v351_v42, %v389_v24  ;;  %v397_v28 = vsub.f32 %v352_v50, %v389_v24 }
 0x336   :  { %v394_v29 = vsub.f32 %v349_v47, %v380_v26  ;;  %v395_v27 = vsub.f32 %v350_v56, %v380_v26 }
 0x337   :  { %v410_v30 = vmul.f32 1.442695, %v396_v25  ;;  %v412_v31 = vmul.f32 1.442695, %v397_v28 }
 0x338   :  { %v406_v32 = vmul.f32 1.442695, %v394_v29  ;;  %v408_v33 = vmul.f32 1.442695, %v395_v27 }
 0x339   :  { %1056 = vpow2.f32 %v410_v30 }
 0x33a   :  { %1058 = vpow2.f32 %v412_v31 }
 0x33b   :  { %v1049_v34 = vpop.eup %1048  ;;  %1060 = vpow2.f32 %v406_v32 }
 0x33c   :  { %v1051_v35 = vpop.eup %1050  ;;  %v423_v36 = vsel %vm353_vm11, %v1049_v34, 0.0  ;;  %1062 = vpow2.f32 %v408_v33 }
 0x33d   :  { %v1053_v37 = vpop.eup %1052  ;;  %v424_v38 = vsel %vm353_vm11, %v1051_v35, 0.0 }
 0x33e   :  { %v1055_v39 = vpop.eup %1054  ;;  %v425_v40 = vadd.f32 %v424_v38, %v423_v36  ;;  %v414_v41 = vsel %vm353_vm11, %v1053_v37, 0.0 }
 0x33f   :  { %v415_v42 = vsel %vm353_vm11, %v1055_v39, 0.0 }
 0x340   :  { %v426_v44 = vrot.slane %v425_v40, 4  ;;  %v416_v46 = vadd.f32 %v415_v42, %v414_v41 }
 0x342   :  { %v427_v47 = vadd.f32 %v426_v44, %v425_v40  ;;  %v417_v48 = vrot.slane %v416_v46, 4 }
 0x343   :  { %v1057_v49 = vpop.eup %1056 }
 0x344   :  { %v1059_v50 = vpop.eup %1058  ;;  %v428_v52 = vrot.slane %v427_v47, 2  ;;  %v418_v53 = vadd.f32 %v417_v48, %v416_v46  ;;  %v441_v54 = vsel %vm353_vm11, %v1057_v49, 0.0 }
 0x345   :  { %v1061_v55 = vpop.eup %1060  ;;  %v442_v56 = vsel %vm353_vm11, %v1059_v50, 0.0 }
 0x346   :  { %v1063_v57 = vpop.eup %1062  ;;  %v429_v58 = vadd.f32 %v428_v52, %v427_v47  ;;  %v419_v59 = vrot.slane %v418_v53, 2  ;;  %v443_v60 = vadd.f32 %v442_v56, %v441_v54  ;;  %v432_v61 = vsel %vm353_vm11, %v1061_v55, 0.0 }
 0x347   :  { %v433_v62 = vsel %vm353_vm11, %v1063_v57, 0.0 }
 0x348   :  { %v430_v63 = vrot.slane %v429_v58, 1  ;;  %v420_v2 = vadd.f32 %v419_v59, %v418_v53  ;;  %v444_v3 = vrot.slane %v443_v60, 4  ;;  %v434_v4 = vadd.f32 %v433_v62, %v432_v61 }
 0x34a   :  { %v431_v5 = vadd.f32 %v430_v63, %v429_v58  ;;  %v421_v6 = vrot.slane %v420_v2, 1  ;;  %v445_v7 = vadd.f32 %v444_v3, %v443_v60  ;;  %v435_v8 = vrot.slane %v434_v4, 4 }
 0x34c   :  { %1064 = vrcp.f32 %v431_v5  ;;  %v422_v9 = vadd.f32 %v421_v6, %v420_v2  ;;  %v446_v10 = vrot.slane %v445_v7, 2  ;;  %v436_v11 = vadd.f32 %v435_v8, %v434_v4 }
 0x34e   :  { %v447_v12 = vadd.f32 %v446_v10, %v445_v7  ;;  %v437_v13 = vrot.slane %v436_v11, 2  ;;  %1066 = vrcp.f32 %v422_v9 }
 0x350   :  { %v448_v14 = vrot.slane %v447_v12, 1  ;;  %v438_v16 = vadd.f32 %v437_v13, %v436_v11 }
 0x352   :  { %v449_v17 = vadd.f32 %v448_v14, %v447_v12  ;;  %v439_v18 = vrot.slane %v438_v16, 1 }
 0x354   :  { %v440_v19 = vadd.f32 %v439_v18, %v438_v16  ;;  %1068 = vrcp.f32 %v449_v17  ;;  %v907_v18 = vld [vmem:[%s1395_s2] ss:$0 sm:$0xff] }
 0x356   :  { %v1065_v20 = vpop.eup %1064  ;;  %1070 = vrcp.f32 %v440_v19 }
 0x357   :  { %v455_v21 = vmul.f32 %v1065_v20, %v1051_v35  ;;  %v454_v22 = vmul.f32 %v1065_v20, %v1049_v34  ;;  %v1032_v34 = vld [vmem:[#allocation5 + $0x10] sm:$0xff]   ;;  %v1033_v35 = vld [vmem:[#allocation5 + $0x18] sm:$0xff]  }
 0x358   :  { %v1067_v23 = vpop.eup %1066 }
 0x359   :  { %v451_v24 = vmul.f32 %v1067_v23, %v1053_v37  ;;  %v452_v26 = vmul.f32 %v1067_v23, %v1055_v39  ;;  %v463_v25 = vpack.c.bf16 %v455_v21, %v454_v22  ;;  %v554_v37 = vrot.slane %v1238_v43, %v1242_v45 }
 0x35b   :  { %v462_v28 = vpack.c.bf16 %v452_v26, %v451_v24  ;;  %v555_v39 = vcombine.high %v554_v37, %v554_v37  ;;  %v562_v41 = vrot.slane %v554_v37, %v1242_v45  ;;  %v1035_v37 = vld [vmem:[#allocation5 + $0x28] sm:$0xff]  }
 0x35d   :  { %974 = vmatprep.mubr.msk.bf16.mxu0 %vm353_vm11, %v462_v28  ;;  %v569_v40 = vrot.slane %v555_v39, %v1242_v45  ;;  %v575_v44 = vrot.slane %v562_v41, %v1248_v51  ;;  %v570_v53 = vcombine.high %v562_v41, %v562_v41  ;;  %v1036_v39 = vld [vmem:[#allocation5 + $0x30] sm:$0xff]   ;;  %v1038_v41 = vld [vmem:[#allocation5 + $0x40] sm:$0xff]  }
 0x35e   :  { %v1069_v29 = vpop.eup %1068  ;;  %975 = vmatmul.mubr.msk.bf16.vlgmr.msra.gmra.mrb[4].mxu0 %vm353_vm11, %v463_v25  ;;  %999 = vmatpush3.bf16.msra.mxu1 %v1036_v39 }
 0x35f   :  { %v460_v27 = vmul.f32 %v1069_v29, %v1057_v49  ;;  %v461_v30 = vmul.f32 %v1069_v29, %v1059_v50  ;;  %983 = vmatpush3.bf16.msra.mxu0 %v1032_v34  ;;  %v579_v42 = vrot.slane %v569_v40, %v1248_v51  ;;  %v571_v52 = vcombine.high %v569_v40, %v569_v40  ;;  %v1037_v40 = vld [vmem:[#allocation5 + $0x38] sm:$0xff]  }
 0x360   :  { %v1071_v31 = vpop.eup %1070  ;;  %984 = vmatprep.subr.bf16.mxu0 %v1154_v15  ;;  %v583_v61 = vrot.slane %v570_v53, %v1248_v51  ;;  %1000 = vmatprep.subr.bf16.mxu1 %v1154_v15 }
 0x361   :  { %v457_v32 = vmul.f32 %v1071_v31, %v1061_v55  ;;  %v458_v33 = vmul.f32 %v1071_v31, %v1063_v57  ;;  %v465_v36 = vpack.c.bf16 %v461_v30, %v460_v27  ;;  %v587_v60 = vrot.slane %v571_v52, %v1248_v51 }
 0x362   :  { %1001 = vmatpush3.bf16.msra.mxu1 %v1037_v40 }
 0x363   :  { %v464_v38 = vpack.c.bf16 %v458_v33, %v457_v32  ;;  %985 = vmatpush3.bf16.msra.mxu0 %v1033_v35  ;;  %v1034_v35 = vld [vmem:[#allocation5 + $0x20] sm:$0xff]   ;;  %1002 = vmatprep.subr.bf16.mxu1 %v1154_v15 }
 0x364   :  { %990 = vmatprep.subr.bf16.mxu0 %v1154_v15 }
 0x365   :  { %978 = vmatprep.mubr.msk.bf16.mxu0 %vm353_vm11, %v464_v38 }
 0x366   :  { %979 = vmatmul.mubr.msk.bf16.gmra.mrb[8].mxu0 %vm353_vm11, %v465_v36  ;;  %1003 = vmatpush3.bf16.msra.mxu1 %v1038_v41 }
 0x367   :  { %986 = vmatprep.mubr.msk.bf16.mxu0 %vm1155_vm1, %v1154_v15  ;;  %1004 = vmatprep.subr.bf16.mxu1 %v1154_v15 }
 0x431   :  { %v976_v46 = vpop.f32.mrb[4].mxu0 }
 0x432   :  { %v594_v47 = vmul.f32 %v976_v46, %v579_v42  ;;  %v516_v48 = vpop.f32.mrb[5].mxu0  ;;  %v1041_v46 = vld [vmem:[#allocation5 + $0x58] sm:$0xff]  }
 0x433   :  { %v592_v49 = vmul.f32 %v575_v44, %v516_v48  ;;  %v977_v50 = vpop.f32.mrb[6].mxu0 }
 0x434   :  { %v601_v54 = vsel %vm81_vm0, %v594_v47, 0.0  ;;  %v595_v55 = vmul.f32 %v977_v50, %v579_v42  ;;  %v519_v43 = vpop.f32.mrb[7].mxu0  ;;  %v1039_v42 = vld [vmem:[#allocation5 + $0x48] sm:$0xff]  }
 0x435   :  { %v600_v56 = vsel %vm81_vm0, %v592_v49, 0.0  ;;  %v593_v57 = vmul.f32 %v575_v44, %v519_v43  ;;  %1005 = vmatpush3.bf16.msra.mxu1 %v1039_v42  ;;  %v1040_v44 = vld [vmem:[#allocation5 + $0x50] sm:$0xff]  }
 0x436   :  { %v602_v58 = vadd.f32 %v601_v54, %v600_v56  ;;  %v608_v45 = vsel %vm81_vm0, %v595_v55, 0.0  ;;  %1006 = vmatprep.subr.bf16.mxu1 %v1154_v15  ;;  %v911_v43 = vld [vmem:[%s1395_s2 + $0x3] ss:$0 sm:$0xff] }
 0x437   :  { %v607_v59 = vsel %vm81_vm0, %v593_v57, 0.0 }
 0x438   :  { %v609_v62 = vadd.f32 %v608_v45, %v607_v59  ;;  %v912_v45 = vld [vmem:[%s1395_s2 + $0x4] ss:$0 sm:$0xff] }
 0x439   :  { %v980_v63 = vpop.f32.mrb[8].mxu0  ;;  %1007 = vmatpush3.bf16.msra.mxu1 %v1040_v44 }
 0x43a   :  { %v532_v2 = vpop.f32.mrb[9].mxu0  ;;  %v598_v3 = vmul.f32 %v980_v63, %v587_v60  ;;  %1008 = vmatprep.subr.bf16.mxu1 %v1154_v15  ;;  %v1042_v63 = vld [vmem:[#allocation5 + $0x60] sm:$0xff]  }
 0x43b   :  { %v596_v4 = vmul.f32 %v583_v61, %v532_v2  ;;  %v981_v5 = vpop.f32.mrb[10].mxu0  ;;  %v1043_v2 = vld [vmem:[#allocation5 + $0x68] sm:$0xff]  }
 0x43c   :  { %v535_v6 = vpop.f32.mrb[11].mxu0  ;;  %v599_v8 = vmul.f32 %v981_v5, %v587_v60  ;;  %v605_v11 = vsel %vm81_vm0, %v598_v3, 0.0  ;;  %v913_v3 = vld [vmem:[%s1395_s2 + $0x6] ss:$0 sm:$0xff] }
 0x43d   :  { %v603_v7 = vsel %vm81_vm0, %v596_v4, 0.0  ;;  %v597_v9 = vmul.f32 %v583_v61, %v535_v6  ;;  %1009 = vmatpush3.bf16.msra.mxu1 %v1041_v46 }
 0x43e   :  { %v604_v10 = vadd.f32 %v603_v7, %v602_v58  ;;  %v612_v51 = vsel %vm81_vm0, %v599_v8, 0.0  ;;  %1010 = vmatprep.subr.bf16.mxu1 %v1154_v15 }
 0x43f   :  { %v610_v12 = vsel %vm81_vm0, %v597_v9, 0.0 }
 0x440   :  { %v606_v13 = vadd.f32 %v605_v11, %v604_v10  ;;  %v611_v14 = vadd.f32 %v610_v12, %v609_v62 }
 0x441   :  { %1011 = vmatpush3.bf16.msra.mxu1 %v1042_v63 }
 0x442   :  { %v613_v16 = vadd.f32 %v612_v51, %v611_v14  ;;  %1012 = vmatprep.subr.bf16.mxu1 %v1154_v15 }
 0x444   :  { %v614_v17 = vpack.c.bf16 %v613_v16, %v606_v13 }
 0x445   :  { %1013 = vmatpush3.bf16.msra.mxu1 %v1043_v2 }
 0x446   :  { %987 = vmatmul.mubr.msk.bf16.vlgmr.msra.gmra.mrb[12].mxu0 %vm81_vm0, %v614_v17 }
 0x447   :  { %994 = vmatprep.mubr.msk.bf16.mxu0 %vm1155_vm1, %v1154_v15  ;;  %991 = vmatpush3.bf16.msra.mxu0 %v1034_v35 }
 0x448   :  { %992 = vmatprep.subr.bf16.mxu0 %v1154_v15  ;;  %v917_v15 = vld [vmem:[%s1395_s2 + $0x5] ss:$0 sm:$0xff] }
 0x44b   :  { %993 = vmatpush3.bf16.msra.mxu0 %v1035_v37 }
 0x519   :  { %v668_v19 = vpop.f32.mrb[12].mxu0 }
 0x51a   :  { %v669_v20 = vadd.f32 %v907_v18, %v668_v19  ;;  %v988_v21 = vpop.f32.mrb[13].mxu0 }
 0x51b   :  { %v671_v22 = vpop.f32.mrb[14].mxu0 }
 0x51c   :  { %v1340_v23 = vadd.f32 %v669_v20, %v1206_v0  ;;  %v672_v24 = vadd.f32 %v907_v18, %v671_v22  ;;  %v989_v26 = vpop.f32.mrb[15].mxu0 }
 0x51e   :  { %v1343_v25 = vadd.f32 %v672_v24, %v1208_v1  ;;  %v677_v28 = vsel %vm81_vm0, %v1340_v23, 0.0 }
 0x51f   :  { %678 = vadd.xlane.f32.xlu1 %v677_v28 }
 0x520   :  { %v680_v29 = vsel %vm81_vm0, %v1343_v25, 0.0 }
 0x523   :  { %681 = vadd.xlane.f32.xlu1 %v680_v29 }
 0x5ac   :  { %v679_v27 = vpop.xlane.xlu1 %678 }
 0x5ad   :  { %v683_v30 = vmul.f32 0.03125, %v679_v27 }
 0x5af   :  { %v685_v31 = vsub.f32 %v1340_v23, %v683_v30 }
 0x5b0   :  { %v682_v32 = vpop.xlane.xlu1 %681 }
 0x5b1   :  { %v684_v0 = vmul.f32 0.03125, %v682_v32  ;;  %v687_v33 = vmul.f32 %v685_v31, %v685_v31 }
 0x5b3   :  { %v686_v36 = vsub.f32 %v1343_v25, %v684_v0  ;;  %v689_v1 = vsel %vm81_vm0, %v687_v33, 0.0 }
 0x5b4   :  { %690 = vadd.xlane.f32.xlu1 %v689_v1 }
 0x5b5   :  { %v688_v38 = vmul.f32 %v686_v36, %v686_v36 }
 0x5b7   :  { %v692_v34 = vsel %vm81_vm0, %v688_v38, 0.0 }
 0x5b8   :  { %693 = vadd.xlane.f32.xlu1 %v692_v34 }
 0x641   :  { %v691_v47 = vpop.xlane.xlu1 %690 }
 0x642   :  { %v695_v48 = vmul.f32 0.03125, %v691_v47 }
 0x644   :  { %v697_v49 = vadd.f32 1e-05, %v695_v48 }
 0x645   :  { %v694_v50 = vpop.xlane.xlu1 %693 }
 0x646   :  { %1072 = vrsqrt.f32 %v697_v49  ;;  %v696_v52 = vmul.f32 0.03125, %v694_v50 }
 0x648   :  { %v698_v53 = vadd.f32 1e-05, %v696_v52 }
 0x64a   :  { %1074 = vrsqrt.f32 %v698_v53 }
 0x650   :  { %v1073_v54 = vpop.eup %1072 }
 0x651   :  { %v701_v55 = vmul.f32 %v1073_v54, %v685_v31 }
 0x653   :  { %v707_v57 = vmul.f32 %v911_v43, %v701_v55 }
 0x654   :  { %v1075_v56 = vpop.eup %1074 }
 0x655   :  { %v702_v58 = vmul.f32 %v1075_v56, %v686_v36  ;;  %v713_v60 = vadd.f32 %v912_v45, %v707_v57 }
 0x657   :  { %v708_v59 = vmul.f32 %v911_v43, %v702_v58 }
 0x659   :  { %v714_v61 = vadd.f32 %v912_v45, %v708_v59 }
 0x65b   :  { %v715_v62 = vpack.c.bf16 %v714_v61, %v713_v60 }
 0x65d   :  { %995 = vmatmul.mubr.msk.bf16.vlgmr.msra.gmra.mrb[16].mxu0 %vm81_vm0, %v715_v62 }
 0x730   :  { %v769_v4 = vpop.f32.mrb[16].mxu0 }
 0x731   :  { %v770_v5 = vadd.f32 %v913_v3, %v769_v4  ;;  %v996_v6 = vpop.f32.mrb[17].mxu0 }
 0x732   :  { %v772_v7 = vpop.f32.mrb[18].mxu0 }
 0x733   :  { %v773_v8 = vadd.f32 %v913_v3, %v772_v7  ;;  %v997_v9 = vpop.f32.mrb[19].mxu0  ;;  %v776_v10 = vmax.f32 %v770_v5, 0.0 }
 0x735   :  { %v777_v11 = vmax.f32 %v773_v8, 0.0 }
 0x737   :  { %v778_v12 = vpack.c.bf16 %v777_v11, %v776_v10 }
 0x739   :  { %1015 = vmatmul.mubr.bf16.vlgmr.msra.gmra.mrb[8].mxu1 %v778_v12 }
 0x80c   :  { %v865_v13 = vpop.f32.mrb[8].mxu1 }
 0x80d   :  { %v866_v14 = vadd.f32 %v917_v15, %v865_v13  ;;  %v1016_v51 = vpop.f32.mrb[9].mxu1 }
 0x80e   :  { %v868_v16 = vpop.f32.mrb[10].mxu1 }
 0x80f   :  { %v872_v17 = vadd.f32 %v866_v14, %v1340_v23  ;;  %v869_v18 = vadd.f32 %v917_v15, %v868_v16  ;;  %v1017_v19 = vpop.f32.mrb[11].mxu1 }
 0x811   :  { %874 = vst.msk [vmem:[#allocation7] sm:$0xff] %vm81_vm0, %v872_v17  ;;  %v873_v20 = vadd.f32 %v869_v18, %v1343_v25 }
 0x813   :  { %875 = vst.msk [vmem:[#allocation7 + $0x8] sm:$0xff] %vm81_vm0, %v873_v20 }
 0x814   :  { %1131 = shalt.err (!%p1128_p6)
}
 0x815   :  { %s1132_s5 = scalar_lea.hbm %s1396_s3, 256 }
 0x816   :  { %p1133_p7 = scmp.ne.s32.totalorder %s1396_s3, %s1132_s5  ;;  %p1136_p8 = scmp.lt.u32.totalorder %s1132_s5, %s1396_s3 }
 0x818   :  { %p1138_p9 = pnand %p1136_p8, %p1133_p7 }
 0x81a   :  { %1141 = shalt.err (!%p1138_p9)
}
 0x81b   :  { %887 = dma.vmem_to_hbm [thread:$0]  %s882_s29, 256, %s1396_s3, [#allocation4], %s1149_s22, %s1149_s22, %s1150_s23  }
 0x81c   :  { %1146 = dma.done.wait [#allocation4], 256  }
 0x81d   :  { %1147 = vsyncadd [#allocation4], 4294967040 }
 0x81e   :  { %891 = vsyncpa [#allocation3], 1 }
 0x81f   :  { %892 = vsyncpa [#allocation6], 1 }
 0x820   :  { %893 = vsyncpa [#allocation4], 1 }

</bundles_post_ra>
